<compile_context>
chip_gen: v6e
topology: v6e:2x2x1
jax: 0.10.0
libtpu: 0.0.40
codegen_flags: <defaults>
</compile_context>

<pallas_src>
import math

import jax
import jax.numpy as jnp
from jax.experimental import pallas as pl
from jax.experimental.pallas import tpu as pltpu

LANE = 128
SUBLANE = 8


def _round_up(n, m):
    return ((n + m - 1) // m) * m


# --------------------------------------------------------------------------
# Pallas kernel: entire DuelingNet forward (MLP trunk + fused dueling heads)
# --------------------------------------------------------------------------
def _make_dueling_kernel(n_hidden, action_size):
    inv_actions = 1.0 / float(action_size)

    def kernel(*refs):
        # refs: x, (w_i, b_i) * n_hidden, w_head1, b_head1, w_head2, b_head2, out
        x_ref = refs[0]
        out_ref = refs[-1]
        params = refs[1:-1]

        h = x_ref[...]  # (TB, in_p) float32 (zero-padded features)

        # ---- trunk: Linear -> ReLU (dropout = identity in eval mode) -------
        idx = 0
        for _ in range(n_hidden):
            w = params[idx][...]        # bf16 (in_p, out_p)
            b = params[idx + 1][...]    # f32  (1, out_p)
            idx += 2
            h = jnp.maximum(
                jnp.dot(h.astype(jnp.bfloat16), w,
                        preferred_element_type=jnp.float32) + b,
                0.0,
            )

        # ---- fused head layer 1: cols [0:64)=adv hidden, [64:128)=val hidden
        w1 = params[idx + 0][...]
        b1 = params[idx + 1][...]
        h1 = jnp.maximum(
            jnp.dot(h.astype(jnp.bfloat16), w1,
                    preferred_element_type=jnp.float32) + b1,
            0.0,
        )

        # ---- fused head layer 2 (block-diagonal):
        #      cols [0:action_size) = A, col action_size = V, rest exactly 0
        w2 = params[idx + 2][...]
        b2 = params[idx + 3][...]
        h2 = jnp.maximum(
            jnp.dot(h1.astype(jnp.bfloat16), w2,
                    preferred_element_type=jnp.float32) + b2,
            0.0,
        )

        v = h2[:, action_size:action_size + 1]            # (TB, 1)
        a_sum = jnp.sum(h2, axis=1, keepdims=True) - v    # padded cols are 0
        a_mean = a_sum * inv_actions

        # dueling combine: V + A - mean_a(A); lane-dense full-width write,
        # wrapper slices [:, :action_size].
        out_ref[...] = (h2 + v - a_mean).astype(out_ref.dtype)

    return kernel


# --------------------------------------------------------------------------
# Wrapper: padding / fusion of params + pallas_call
# --------------------------------------------------------------------------
def dueling_forward(x, trunk_params, adv_params, val_params):
    """x: (B, state_size) f32; params are lists of (W, b), W:(in,out), b:(1,out)."""
    n_hidden = len(trunk_params)
    batch, state_size = x.shape
    action_size = adv_params[1][0].shape[1]

    # Batch tile: multiple of 8 sublanes, capped so big batches pipeline.
    tb = 256 if batch >= 256 else _round_up(batch, SUBLANE)
    b_pad = _round_up(batch, tb)

    in_p = _round_up(state_size, LANE)
    x_p = jnp.pad(x.astype(jnp.float32),
                  ((0, b_pad - batch), (0, in_p - state_size)))

    flat_args = [x_p]

    # Trunk weights padded to lane multiples (zero rows/cols keep math exact).
    prev_p = in_p
    for (w, b) in trunk_params:
        fin, fout = w.shape
        fout_p = _round_up(fout, LANE)
        w_p = jnp.zeros((prev_p, fout_p), jnp.float32).at[:fin, :fout].set(w)
        b_p = jnp.zeros((1, fout_p), jnp.float32).at[:, :fout].set(b)
        flat_args += [w_p.astype(jnp.bfloat16), b_p]
        prev_p = fout_p

    (w_a1, b_a1), (w_a2, b_a2) = adv_params
    (w_v1, b_v1), (w_v2, b_v2) = val_params

    # Fused head layer 1: [fc1_adv | fc1_val] -> (hidden_p, 128)
    na1 = w_a1.shape[1]
    nv1 = w_v1.shape[1]
    h1_p = _round_up(na1 + nv1, LANE)
    w1 = jnp.zeros((prev_p, h1_p), jnp.float32)
    w1 = w1.at[:w_a1.shape[0], :na1].set(w_a1)
    w1 = w1.at[:w_v1.shape[0], na1:na1 + nv1].set(w_v1)
    b1 = jnp.zeros((1, h1_p), jnp.float32)
    b1 = b1.at[:, :na1].set(b_a1)
    b1 = b1.at[:, na1:na1 + nv1].set(b_v1)

    # Fused head layer 2: block-diag [fc2_adv ; fc2_val] -> (h1_p, 128)
    # Output layout: cols [0:action_size)=A, col action_size=V, rest zero.
    out_p = _round_up(action_size + 1, LANE)
    w2 = jnp.zeros((h1_p, out_p), jnp.float32)
    w2 = w2.at[:w_a2.shape[0], :action_size].set(w_a2)
    w2 = w2.at[na1:na1 + w_v2.shape[0], action_size:action_size + 1].set(w_v2)
    b2 = jnp.zeros((1, out_p), jnp.float32)
    b2 = b2.at[:, :action_size].set(b_a2)
    b2 = b2.at[:, action_size:action_size + 1].set(b_v2)

    flat_args += [w1.astype(jnp.bfloat16), b1, w2.astype(jnp.bfloat16), b2]

    grid = (b_pad // tb,)

    def const_spec(arr):
        # Weights/biases: constant block index -> VMEM-resident across steps.
        return pl.BlockSpec(arr.shape, lambda i: tuple(0 for _ in arr.shape))

    in_specs = [pl.BlockSpec((tb, in_p), lambda i: (i, 0))]
    in_specs += [const_spec(a) for a in flat_args[1:]]
    out_spec = pl.BlockSpec((tb, out_p), lambda i: (i, 0))

    kernel = _make_dueling_kernel(n_hidden, action_size)

    y = pl.pallas_call(
        kernel,
        out_shape=jax.ShapeDtypeStruct((b_pad, out_p), jnp.float32),
        grid=grid,
        in_specs=in_specs,
        out_specs=out_spec,
        compiler_params=pltpu.CompilerParams(
            dimension_semantics=("parallel",)),
    )(*flat_args)

    return y[:batch, :action_size]


# --------------------------------------------------------------------------
# Deterministic parameter init (PyTorch nn.Linear default: U(-k, k), k=1/sqrt(fan_in))
# --------------------------------------------------------------------------
def _init_linear(key, fan_in, fan_out):
    kw, kb = jax.random.split(key)
    bound = 1.0 / math.sqrt(fan_in)
    w = jax.random.uniform(kw, (fan_in, fan_out), jnp.float32, -bound, bound)
    b = jax.random.uniform(kb, (1, fan_out), jnp.float32, -bound, bound)
    return w, b


def init_dueling_params(key, state_size, action_size, hidden_layers):
    keys = jax.random.split(key, len(hidden_layers) + 4)
    trunk = []
    in_dim = state_size
    for i, h in enumerate(hidden_layers):
        trunk.append(_init_linear(keys[i], in_dim, h))
        in_dim = h
    k_off = len(hidden_layers)
    adv = [
        _init_linear(keys[k_off + 0], hidden_layers[-1], 64),
        _init_linear(keys[k_off + 1], 64, action_size),
    ]
    val = [
        _init_linear(keys[k_off + 2], hidden_layers[-1], 64),
        _init_linear(keys[k_off + 3], 64, 1),
    ]
    return trunk, adv, val


# --------------------------------------------------------------------------
# Pure-JAX reference (same bf16-weight / f32-accumulate arithmetic)
# --------------------------------------------------------------------------
def dueling_ref(x, trunk, adv, val):
    def lin(h, w, b):
        return jnp.dot(h.astype(jnp.bfloat16), w.astype(jnp.bfloat16),
                       preferred_element_type=jnp.float32) + b

    h = x
    for (w, b) in trunk:
        h = jnp.maximum(lin(h, w, b), 0.0)
    a = jnp.maximum(lin(h, *adv[0]), 0.0)
    a = jnp.maximum(lin(a, *adv[1]), 0.0)
    v = jnp.maximum(lin(h, *val[0]), 0.0)
    v = jnp.maximum(lin(v, *val[1]), 0.0)
    return v + a - jnp.mean(a, axis=1, keepdims=True)


if __name__ == "__main__":
    # Small shapes consistent with the module's forward.
    batch = 8
    state_size = 32
    action_size = 8
    hidden_layers = [64, 32]

    key = jax.random.PRNGKey(0)
    k_x, k_p = jax.random.split(key)
    x = jax.random.normal(k_x, (batch, state_size), jnp.float32)

    trunk, adv, val = init_dueling_params(k_p, state_size, action_size, hidden_layers)

    out = dueling_forward(x, trunk, adv, val)
    out = jax.block_until_ready(out)

    ref = dueling_ref(x, trunk, adv, val)
    assert out.shape == (batch, action_size), out.shape
    max_err = float(jnp.max(jnp.abs(out - ref)))
    assert jnp.allclose(out, ref, atol=1e-2, rtol=1e-2), max_err

    print("KERNEL_OK")
</pallas_src>

<mosaic_0001>
module attributes {stable_mosaic.version = 11 : i64} {
  func.func @kernel(%arg0: i32, %arg1: memref<8x128xf32, #tpu.memory_space<vmem>>, %arg2: memref<128x128xbf16, #tpu.memory_space<vmem>>, %arg3: memref<1x128xf32, #tpu.memory_space<vmem>>, %arg4: memref<128x128xbf16, #tpu.memory_space<vmem>>, %arg5: memref<1x128xf32, #tpu.memory_space<vmem>>, %arg6: memref<128x128xbf16, #tpu.memory_space<vmem>>, %arg7: memref<1x128xf32, #tpu.memory_space<vmem>>, %arg8: memref<128x128xbf16, #tpu.memory_space<vmem>>, %arg9: memref<1x128xf32, #tpu.memory_space<vmem>>, %arg10: memref<8x128xf32, #tpu.memory_space<vmem>>) attributes {dimension_semantics = [#tpu.dimension_semantics<parallel>], iteration_bounds = array<i64: 1>, scalar_prefetch = 0 : i64, scratch_operands = 0 : i64, tpu.core_type = #tpu.core_type<tc>, window_params = [{transform_indices = @transform_0, window_bounds = array<i64: 8, 128>}, {pipeline_mode = #tpu.pipeline_mode<synchronous>, transform_indices = @transform_1, window_bounds = array<i64: 128, 128>}, {pipeline_mode = #tpu.pipeline_mode<synchronous>, transform_indices = @transform_2, window_bounds = array<i64: 1, 128>}, {pipeline_mode = #tpu.pipeline_mode<synchronous>, transform_indices = @transform_3, window_bounds = array<i64: 128, 128>}, {pipeline_mode = #tpu.pipeline_mode<synchronous>, transform_indices = @transform_4, window_bounds = array<i64: 1, 128>}, {pipeline_mode = #tpu.pipeline_mode<synchronous>, transform_indices = @transform_5, window_bounds = array<i64: 128, 128>}, {pipeline_mode = #tpu.pipeline_mode<synchronous>, transform_indices = @transform_6, window_bounds = array<i64: 1, 128>}, {pipeline_mode = #tpu.pipeline_mode<synchronous>, transform_indices = @transform_7, window_bounds = array<i64: 128, 128>}, {pipeline_mode = #tpu.pipeline_mode<synchronous>, transform_indices = @transform_8, window_bounds = array<i64: 1, 128>}, {transform_indices = @transform_9, window_bounds = array<i64: 8, 128>}]} {
    %c0 = arith.constant 0 : index
    %c0_0 = arith.constant 0 : index
    %0 = vector.load %arg1[%c0, %c0_0] : memref<8x128xf32, #tpu.memory_space<vmem>>, vector<8x128xf32>
    %c0_1 = arith.constant 0 : index
    %c0_2 = arith.constant 0 : index
    %1 = vector.load %arg2[%c0_1, %c0_2] : memref<128x128xbf16, #tpu.memory_space<vmem>>, vector<128x128xbf16>
    %c0_3 = arith.constant 0 : index
    %c0_4 = arith.constant 0 : index
    %2 = vector.load %arg3[%c0_3, %c0_4] : memref<1x128xf32, #tpu.memory_space<vmem>>, vector<1x128xf32>
    %3 = arith.truncf %0 : vector<8x128xf32> to vector<8x128xbf16>
    %cst = arith.constant dense<0.000000e+00> : vector<8x128xf32>
    %4 = tpu.matmul %3, %1, %cst {dimension_numbers = #tpu.dot_dimension_numbers<[1], [0], [0], [1], [0, 0, 1, 1], [], []>} : vector<8x128xbf16>, vector<128x128xbf16>, vector<8x128xf32> -> vector<8x128xf32>
    %5 = vector.broadcast %2 : vector<1x128xf32> to vector<8x128xf32>
    %6 = arith.addf %4, %5 : vector<8x128xf32>
    %cst_5 = arith.constant 0.000000e+00 : f32
    %7 = vector.broadcast %cst_5 : f32 to vector<8x128xf32>
    %8 = arith.maximumf %6, %7 : vector<8x128xf32>
    %c0_6 = arith.constant 0 : index
    %c0_7 = arith.constant 0 : index
    %9 = vector.load %arg4[%c0_6, %c0_7] : memref<128x128xbf16, #tpu.memory_space<vmem>>, vector<128x128xbf16>
    %c0_8 = arith.constant 0 : index
    %c0_9 = arith.constant 0 : index
    %10 = vector.load %arg5[%c0_8, %c0_9] : memref<1x128xf32, #tpu.memory_space<vmem>>, vector<1x128xf32>
    %11 = arith.truncf %8 : vector<8x128xf32> to vector<8x128xbf16>
    %cst_10 = arith.constant dense<0.000000e+00> : vector<8x128xf32>
    %12 = tpu.matmul %11, %9, %cst_10 {dimension_numbers = #tpu.dot_dimension_numbers<[1], [0], [0], [1], [0, 0, 1, 1], [], []>} : vector<8x128xbf16>, vector<128x128xbf16>, vector<8x128xf32> -> vector<8x128xf32>
    %13 = vector.broadcast %10 : vector<1x128xf32> to vector<8x128xf32>
    %14 = arith.addf %12, %13 : vector<8x128xf32>
    %cst_11 = arith.constant 0.000000e+00 : f32
    %15 = vector.broadcast %cst_11 : f32 to vector<8x128xf32>
    %16 = arith.maximumf %14, %15 : vector<8x128xf32>
    %c0_12 = arith.constant 0 : index
    %c0_13 = arith.constant 0 : index
    %17 = vector.load %arg6[%c0_12, %c0_13] : memref<128x128xbf16, #tpu.memory_space<vmem>>, vector<128x128xbf16>
    %c0_14 = arith.constant 0 : index
    %c0_15 = arith.constant 0 : index
    %18 = vector.load %arg7[%c0_14, %c0_15] : memref<1x128xf32, #tpu.memory_space<vmem>>, vector<1x128xf32>
    %19 = arith.truncf %16 : vector<8x128xf32> to vector<8x128xbf16>
    %cst_16 = arith.constant dense<0.000000e+00> : vector<8x128xf32>
    %20 = tpu.matmul %19, %17, %cst_16 {dimension_numbers = #tpu.dot_dimension_numbers<[1], [0], [0], [1], [0, 0, 1, 1], [], []>} : vector<8x128xbf16>, vector<128x128xbf16>, vector<8x128xf32> -> vector<8x128xf32>
    %21 = vector.broadcast %18 : vector<1x128xf32> to vector<8x128xf32>
    %22 = arith.addf %20, %21 : vector<8x128xf32>
    %cst_17 = arith.constant 0.000000e+00 : f32
    %23 = vector.broadcast %cst_17 : f32 to vector<8x128xf32>
    %24 = arith.maximumf %22, %23 : vector<8x128xf32>
    %c0_18 = arith.constant 0 : index
    %c0_19 = arith.constant 0 : index
    %25 = vector.load %arg8[%c0_18, %c0_19] : memref<128x128xbf16, #tpu.memory_space<vmem>>, vector<128x128xbf16>
    %c0_20 = arith.constant 0 : index
    %c0_21 = arith.constant 0 : index
    %26 = vector.load %arg9[%c0_20, %c0_21] : memref<1x128xf32, #tpu.memory_space<vmem>>, vector<1x128xf32>
    %27 = arith.truncf %24 : vector<8x128xf32> to vector<8x128xbf16>
    %cst_22 = arith.constant dense<0.000000e+00> : vector<8x128xf32>
    %28 = tpu.matmul %27, %25, %cst_22 {dimension_numbers = #tpu.dot_dimension_numbers<[1], [0], [0], [1], [0, 0, 1, 1], [], []>} : vector<8x128xbf16>, vector<128x128xbf16>, vector<8x128xf32> -> vector<8x128xf32>
    %29 = vector.broadcast %26 : vector<1x128xf32> to vector<8x128xf32>
    %30 = arith.addf %28, %29 : vector<8x128xf32>
    %cst_23 = arith.constant 0.000000e+00 : f32
    %31 = vector.broadcast %cst_23 : f32 to vector<8x128xf32>
    %32 = arith.maximumf %30, %31 : vector<8x128xf32>
    %33 = vector.extract_strided_slice %32 {offsets = [0, 8], sizes = [8, 1], strides = [1, 1]} : vector<8x128xf32> to vector<8x1xf32>
    %cst_24 = arith.constant dense<0.000000e+00> : vector<8xf32>
    %34 = vector.multi_reduction <add>, %32, %cst_24 [1] : vector<8x128xf32> to vector<8xf32>
    %35 = vector.shape_cast %34 : vector<8xf32> to vector<8x1xf32>
    %36 = arith.subf %35, %33 : vector<8x1xf32>
    %cst_25 = arith.constant 1.250000e-01 : f32
    %37 = vector.broadcast %cst_25 : f32 to vector<8x1xf32>
    %38 = arith.mulf %36, %37 : vector<8x1xf32>
    %39 = vector.broadcast %33 : vector<8x1xf32> to vector<8x128xf32>
    %40 = arith.addf %32, %39 : vector<8x128xf32>
    %41 = vector.broadcast %38 : vector<8x1xf32> to vector<8x128xf32>
    %42 = arith.subf %40, %41 : vector<8x128xf32>
    %c0_26 = arith.constant 0 : index
    %c0_27 = arith.constant 0 : index
    %43 = vector.load %arg10[%c0_26, %c0_27] : memref<8x128xf32, #tpu.memory_space<vmem>>, vector<8x128xf32>
    tpu.vector_store %arg10[%c0_26, %c0_27], %42 {strides = array<i32>} : memref<8x128xf32, #tpu.memory_space<vmem>>, vector<8x128xf32>,
    return
  }
  func.func @transform_0(%arg0: i32) -> (i32, i32) {
    %c0_i32 = arith.constant 0 : i32
    %c0_i32_0 = arith.constant 0 : i32
    return %arg0, %c0_i32 : i32, i32
  }
  func.func @transform_1(%arg0: i32) -> (i32, i32) {
    %c0_i32 = arith.constant 0 : i32
    %c0_i32_0 = arith.constant 0 : i32
    %c0_i32_1 = arith.constant 0 : i32
    return %c0_i32, %c0_i32_0 : i32, i32
  }
  func.func @transform_2(%arg0: i32) -> (i32, i32) {
    %c0_i32 = arith.constant 0 : i32
    %c0_i32_0 = arith.constant 0 : i32
    %c0_i32_1 = arith.constant 0 : i32
    return %c0_i32, %c0_i32_0 : i32, i32
  }
  func.func @transform_3(%arg0: i32) -> (i32, i32) {
    %c0_i32 = arith.constant 0 : i32
    %c0_i32_0 = arith.constant 0 : i32
    %c0_i32_1 = arith.constant 0 : i32
    return %c0_i32, %c0_i32_0 : i32, i32
  }
  func.func @transform_4(%arg0: i32) -> (i32, i32) {
    %c0_i32 = arith.constant 0 : i32
    %c0_i32_0 = arith.constant 0 : i32
    %c0_i32_1 = arith.constant 0 : i32
    return %c0_i32, %c0_i32_0 : i32, i32
  }
  func.func @transform_5(%arg0: i32) -> (i32, i32) {
    %c0_i32 = arith.constant 0 : i32
    %c0_i32_0 = arith.constant 0 : i32
    %c0_i32_1 = arith.constant 0 : i32
    return %c0_i32, %c0_i32_0 : i32, i32
  }
  func.func @transform_6(%arg0: i32) -> (i32, i32) {
    %c0_i32 = arith.constant 0 : i32
    %c0_i32_0 = arith.constant 0 : i32
    %c0_i32_1 = arith.constant 0 : i32
    return %c0_i32, %c0_i32_0 : i32, i32
  }
  func.func @transform_7(%arg0: i32) -> (i32, i32) {
    %c0_i32 = arith.constant 0 : i32
    %c0_i32_0 = arith.constant 0 : i32
    %c0_i32_1 = arith.constant 0 : i32
    return %c0_i32, %c0_i32_0 : i32, i32
  }
  func.func @transform_8(%arg0: i32) -> (i32, i32) {
    %c0_i32 = arith.constant 0 : i32
    %c0_i32_0 = arith.constant 0 : i32
    %c0_i32_1 = arith.constant 0 : i32
    return %c0_i32, %c0_i32_0 : i32, i32
  }
  func.func @transform_9(%arg0: i32) -> (i32, i32) {
    %c0_i32 = arith.constant 0 : i32
    %c0_i32_0 = arith.constant 0 : i32
    return %arg0, %c0_i32 : i32, i32
  }
}

</mosaic_0001>

<bundles_post_ra>
// kernel: tpu_custom_call.1
= control target key start
LH: loop header
LB: loop body
LE: loop exit
PB: predicated region body
PF: predicated region fallthrough
CT: control target
= control target key end

     0   :  { %14 = vsyncpa [#allocation3], 0  ;;  %s1055_s0 = inlined_call_operand.hbm [shape: f32[8,128], index: 0, kind: input, shape index: {}]   ;;  %s1056_s1 = inlined_call_operand.hbm [shape: bf16[128,128], index: 1, kind: input, shape index: {}]   ;;  %s1057_s2 = inlined_call_operand.vmem [shape: f32[1,128], index: 2, kind: input, shape index: {}]   ;;  %s1058_s3 = inlined_call_operand.hbm [shape: bf16[128,128], index: 3, kind: input, shape index: {}]   ;;  %s1059_s4 = inlined_call_operand.vmem [shape: f32[1,128], index: 4, kind: input, shape index: {}]   ;;  %s1060_s5 = inlined_call_operand.hbm [shape: bf16[128,128], index: 5, kind: input, shape index: {}]   ;;  %s1061_s6 = inlined_call_operand.vmem [shape: f32[1,128], index: 6, kind: input, shape index: {}]   ;;  %s1062_s7 = inlined_call_operand.hbm [shape: bf16[128,128], index: 7, kind: input, shape index: {}]   ;;  %s1063_s8 = inlined_call_operand.vmem [shape: f32[1,128], index: 8, kind: input, shape index: {}]   ;;  %s1064_s9 = inlined_call_operand.hbm [shape: f32[8,128], index: 9, kind: output, shape index: {}]  }
   0x1   :  { %15 = vsyncpa [#allocation6], 0 }
   0x2   :  { %16 = vsyncpa [#allocation9], 0 }
   0x3   :  { %17 = vsyncpa [#allocation4], 0  ;;  %s912_s30 = smov [#allocation5]  }
   0x4   :  { %s33_s10 = sshll.u32 %s912_s30, 4  ;;  %s34_s10 = int_to_ptr.vmem [resolvable:$true] %s33_s10 }
   0x5   :  { %s792_s11 = scalar_lea.vmem %s34_s10, 1024  ;;  %p797_p1 = scmp.lt.s32.totalorder %s34_s10, %s34_s10 }
   0x6   :  { %p793_p0 = scmp.ne.s32.totalorder %s34_s10, %s792_s11  ;;  %p798_p2 = scmp.lt.s32.totalorder %s792_s11, %s792_s11 }
   0x8   :  { %p799_p3 = por %p798_p2, %p797_p1 }
   0xa   :  { %p800_p4 = pnand %p799_p3, %p793_p0 }
   0xc   :  { %803 = shalt.err (!%p800_p4)
}
   0xd   :  { %s913_s12 = smov 64   ;;  %s914_s13 = smov 4  }
   0xe   :  { %39 = dma.hbm_to_vmem [thread:$0]  %s1056_s1, 1024, %s34_s10, [#allocation6], %s913_s12, %s913_s12, %s914_s13  }
   0xf   :  { %s915_s16 = smov [#allocation8]   ;;  %s916_s18 = smov [#allocation2]  }
  0x10   :  { %s61_s17 = sshll.u32 %s915_s16, 4  ;;  %s24_s19 = sshll.u32 %s916_s18, 4  ;;  %s62_s17 = int_to_ptr.vmem [resolvable:$true] %s61_s17  ;;  %s25_s19 = int_to_ptr.vmem [resolvable:$true] %s24_s19 }
  0x11   :  { %s812_s20 = scalar_lea.vmem %s62_s17, 1024  ;;  %p817_p6 = scmp.lt.s32.totalorder %s62_s17, %s62_s17 }
  0x12   :  { %p813_p5 = scmp.ne.s32.totalorder %s62_s17, %s812_s20  ;;  %p818_p7 = scmp.lt.s32.totalorder %s812_s20, %s812_s20 }
  0x14   :  { %p819_p8 = por %p818_p7, %p817_p6 }
  0x16   :  { %p820_p9 = pnand %p819_p8, %p813_p5 }
  0x18   :  { %823 = shalt.err (!%p820_p9)
}
  0x19   :  { %67 = dma.hbm_to_vmem [thread:$0]  %s1060_s5, 1024, %s62_s17, [#allocation9], %s913_s12, %s913_s12, %s914_s13  }
  0x1a   :  { %s832_s1 = scalar_lea.vmem %s25_s19, 128  ;;  %p837_p11 = scmp.lt.s32.totalorder %s25_s19, %s25_s19 }
  0x1b   :  { %p833_p10 = scmp.ne.s32.totalorder %s25_s19, %s832_s1  ;;  %p838_p12 = scmp.lt.s32.totalorder %s832_s1, %s832_s1 }
  0x1d   :  { %p839_p13 = por %p838_p12, %p837_p11 }
  0x1f   :  { %p840_p0 = pnand %p839_p13, %p833_p10 }
  0x21   :  { %843 = shalt.err (!%p840_p0)
}
  0x22   :  { %27 = dma.hbm_to_vmem [thread:$0]  %s1055_s0, 128, %s25_s19, [#allocation3]  }
  0x23   :  { %s917_s25 = smov [#allocation7]   ;;  %s918_s27 = smov [#allocation10]  }
  0x24   :  { %s47_s26 = sshll.u32 %s917_s25, 4  ;;  %s75_s28 = sshll.u32 %s918_s27, 4  ;;  %s48_s26 = int_to_ptr.vmem [resolvable:$true] %s47_s26  ;;  %s76_s28 = int_to_ptr.vmem [resolvable:$true] %s75_s28 }
  0x25   :  { %s852_s29 = scalar_lea.vmem %s48_s26, 1024  ;;  %p857_p2 = scmp.lt.s32.totalorder %s48_s26, %s48_s26 }
  0x26   :  { %p853_p1 = scmp.ne.s32.totalorder %s48_s26, %s852_s29  ;;  %p858_p3 = scmp.lt.s32.totalorder %s852_s29, %s852_s29 }
  0x28   :  { %p859_p4 = por %p858_p3, %p857_p2 }
  0x2a   :  { %p860_p5 = pnand %p859_p4, %p853_p1 }
  0x2c   :  { %863 = shalt.err (!%p860_p5)
}
  0x2d   :  { %53 = dma.hbm_to_vmem [thread:$0]  %s1058_s3, 1024, %s48_s26, [#allocation6], %s913_s12, %s913_s12, %s914_s13  }
  0x2e   :  { %s872_s0 = scalar_lea.vmem %s76_s28, 1024  ;;  %p877_p7 = scmp.lt.s32.totalorder %s76_s28, %s76_s28 }
  0x2f   :  { %p873_p6 = scmp.ne.s32.totalorder %s76_s28, %s872_s0  ;;  %p878_p8 = scmp.lt.s32.totalorder %s872_s0, %s872_s0 }
  0x31   :  { %p879_p9 = por %p878_p8, %p877_p7 }
  0x33   :  { %p880_p10 = pnand %p879_p9, %p873_p6 }
  0x35   :  { %883 = shalt.err (!%p880_p10)
}
  0x36   :  { %81 = dma.hbm_to_vmem [thread:$0]  %s1062_s7, 1024, %s76_s28, [#allocation9], %s913_s12, %s913_s12, %s914_s13  }
  0x37   :  { %904 = dma.done.wait [#allocation3], 128  }
  0x38   :  { %905 = vsyncadd [#allocation3], 4294967168 }
  0x39   :  { %906 = dma.done.wait [#allocation6], 2048  }
  0x3a   :  { %907 = vsyncadd [#allocation6], 4294965248 }
  0x3b   :  { %908 = dma.done.wait [#allocation9], 2048  }
  0x3c   :  { %909 = vsyncadd [#allocation9], 4294965248  ;;  %v919_v0 = vmov 0.0   ;;  %vm920_vm0 = vmmov 0   ;;  %v752_v1 = vld [vmem:[#allocation5 + $0x38] sm:$0xff]   ;;  %v753_v2 = vld [vmem:[#allocation5 + $0x30] sm:$0xff]  }
  0x3d   :  { %659 = vmatprep.subr.bf16.mxu0 %v919_v0  ;;  %675 = vmatprep.mubr.msk.bf16.mxu0 %vm920_vm0, %v919_v0  ;;  %v754_v3 = vld [vmem:[#allocation5 + $0x28] sm:$0xff]   ;;  %v760_v4 = vld [vmem:[#allocation7 + $0x38] sm:$0xff]   ;;  %v755_v5 = vld [vmem:[#allocation5 + $0x20] sm:$0xff]   ;;  %v921_v59 = vmov 8  }
  0x3e   :  { %679 = vmatprep.subr.bf16.mxu1 %v919_v0  ;;  %695 = vmatprep.mubr.msk.bf16.mxu1 %vm920_vm0, %v919_v0  ;;  %v761_v6 = vld [vmem:[#allocation7 + $0x30] sm:$0xff]   ;;  %v756_v7 = vld [vmem:[#allocation5 + $0x18] sm:$0xff]   ;;  %v762_v8 = vld [vmem:[#allocation7 + $0x28] sm:$0xff]  }
  0x3f   :  { %660 = vmatpush3.bf16.msra.mxu0 %v752_v1  ;;  %680 = vmatpush3.bf16.msra.mxu1 %v760_v4  ;;  %v757_v9 = vld [vmem:[#allocation5 + $0x10] sm:$0xff]   ;;  %v763_v10 = vld [vmem:[#allocation7 + $0x20] sm:$0xff]   ;;  %v758_v11 = vld [vmem:[#allocation5 + $0x8] sm:$0xff]  }
  0x40   :  { %661 = vmatprep.subr.bf16.mxu0 %v919_v0  ;;  %681 = vmatprep.subr.bf16.mxu1 %v919_v0  ;;  %v764_v12 = vld [vmem:[#allocation7 + $0x18] sm:$0xff]   ;;  %v759_v13 = vld [vmem:[#allocation5] sm:$0xff]   ;;  %v765_v15 = vld [vmem:[#allocation7 + $0x10] sm:$0xff]  }
  0x41   :  { %v100_v14 = vld [vmem:[#allocation2] sm:$0xff]  ;;  %v766_v17 = vld [vmem:[#allocation7 + $0x8] sm:$0xff]   ;;  %v767_v18 = vld [vmem:[#allocation7] sm:$0xff]   ;;  %750 = vset.pattern.permute.xlu0 %v921_v59  ;;  %751 = vset.pattern.permute.xlu1 %v921_v59 }
  0x42   :  { %v118_v16 = vpack.c.bf16 %v100_v14, %v100_v14  ;;  %v768_v19 = vld [vmem:[#allocation8 + $0x38] sm:$0xff]   ;;  %v769_v20 = vld [vmem:[#allocation8 + $0x30] sm:$0xff]   ;;  %v770_v21 = vld [vmem:[#allocation8 + $0x28] sm:$0xff]  }
  0x43   :  { %662 = vmatpush3.bf16.msra.mxu0 %v753_v2  ;;  %682 = vmatpush3.bf16.msra.mxu1 %v761_v6  ;;  %v771_v22 = vld [vmem:[#allocation8 + $0x20] sm:$0xff]   ;;  %v772_v23 = vld [vmem:[#allocation8 + $0x18] sm:$0xff]   ;;  %v773_v24 = vld [vmem:[#allocation8 + $0x10] sm:$0xff]  }
  0x44   :  { %663 = vmatprep.subr.bf16.mxu0 %v919_v0  ;;  %683 = vmatprep.subr.bf16.mxu1 %v919_v0  ;;  %v587_v25 = vld [vmem:[%s1057_s2] ss:$0 sm:$0xff]  ;;  %v774_v33 = vld [vmem:[#allocation8 + $0x8] sm:$0xff]   ;;  %v775_v34 = vld [vmem:[#allocation8] sm:$0xff]  }
  0x45   :  { %v776_v35 = vld [vmem:[#allocation10 + $0x38] sm:$0xff]   ;;  %v777_v36 = vld [vmem:[#allocation10 + $0x30] sm:$0xff]   ;;  %v778_v37 = vld [vmem:[#allocation10 + $0x28] sm:$0xff]  }
  0x46   :  { %v779_v38 = vld [vmem:[#allocation10 + $0x20] sm:$0xff]   ;;  %v780_v39 = vld [vmem:[#allocation10 + $0x18] sm:$0xff]   ;;  %v781_v40 = vld [vmem:[#allocation10 + $0x10] sm:$0xff]  }
  0x47   :  { %664 = vmatpush3.bf16.msra.mxu0 %v754_v3  ;;  %684 = vmatpush3.bf16.msra.mxu1 %v762_v8  ;;  %v596_v41 = vld [vmem:[%s1059_s4] ss:$0 sm:$0xff]  ;;  %v782_v49 = vld [vmem:[#allocation10 + $0x8] sm:$0xff]   ;;  %v783_v50 = vld [vmem:[#allocation10] sm:$0xff]  }
  0x48   :  { %665 = vmatprep.subr.bf16.mxu0 %v919_v0  ;;  %685 = vmatprep.subr.bf16.mxu1 %v919_v0  ;;  %v605_v51 = vld [vmem:[%s1061_s6] ss:$0 sm:$0xff]  ;;  %s922_s6 = smov [#allocation11]  }
  0x49   :  { %v614_v60 = vld [vmem:[%s1063_s8] ss:$0 sm:$0xff]  ;;  %s576_s16 = sshll.u32 %s922_s6, 4  ;;  %s577_s16 = int_to_ptr.vmem [resolvable:$true] %s576_s16 }
  0x4a   :  { %s884_s8 = scalar_lea.vmem %s577_s16, 128  ;;  %p889_p12 = scmp.lt.s32.totalorder %s577_s16, %s577_s16 }
  0x4b   :  { %666 = vmatpush3.bf16.msra.mxu0 %v755_v5  ;;  %686 = vmatpush3.bf16.msra.mxu1 %v763_v10  ;;  %p885_p11 = scmp.ne.s32.totalorder %s577_s16, %s884_s8  ;;  %p890_p13 = scmp.lt.s32.totalorder %s884_s8, %s884_s8 }
  0x4c   :  { %667 = vmatprep.subr.bf16.mxu0 %v919_v0  ;;  %687 = vmatprep.subr.bf16.mxu1 %v919_v0 }
  0x4d   :  { %p891_p0 = por %p890_p13, %p889_p12 }
  0x4f   :  { %668 = vmatpush3.bf16.msra.mxu0 %v756_v7  ;;  %688 = vmatpush3.bf16.msra.mxu1 %v764_v12  ;;  %p892_p1 = pnand %p891_p0, %p885_p11 }
  0x50   :  { %669 = vmatprep.subr.bf16.mxu0 %v919_v0  ;;  %689 = vmatprep.subr.bf16.mxu1 %v919_v0 }
  0x53   :  { %670 = vmatpush3.bf16.msra.mxu0 %v757_v9  ;;  %690 = vmatpush3.bf16.msra.mxu1 %v765_v15 }
  0x54   :  { %671 = vmatprep.subr.bf16.mxu0 %v919_v0  ;;  %691 = vmatprep.subr.bf16.mxu1 %v919_v0 }
  0x57   :  { %672 = vmatpush3.bf16.msra.mxu0 %v758_v11  ;;  %692 = vmatpush3.bf16.msra.mxu1 %v766_v17 }
  0x58   :  { %673 = vmatprep.subr.bf16.mxu0 %v919_v0  ;;  %693 = vmatprep.subr.bf16.mxu1 %v919_v0 }
  0x5b   :  { %674 = vmatpush3.bf16.msra.mxu0 %v759_v13  ;;  %694 = vmatpush3.bf16.msra.mxu1 %v767_v18 }
  0x5c   :  { %699 = vmatprep.subr.bf16.mxu0 %v919_v0  ;;  %719 = vmatprep.subr.bf16.mxu1 %v919_v0 }
  0x5e   :  { %676 = vmatmul.mubr.bf16.vlgmr.msra.gmra.mxu0 %v118_v16 }
  0x5f   :  { %715 = vmatprep.mubr.msk.bf16.mxu0 %vm920_vm0, %v919_v0  ;;  %700 = vmatpush3.bf16.msra.mxu0 %v768_v19 }
  0x60   :  { %701 = vmatprep.subr.bf16.mxu0 %v919_v0 }
  0x63   :  { %702 = vmatpush3.bf16.msra.mxu0 %v769_v20 }
  0x64   :  { %703 = vmatprep.subr.bf16.mxu0 %v919_v0 }
  0x67   :  { %704 = vmatpush3.bf16.msra.mxu0 %v770_v21 }
  0x68   :  { %705 = vmatprep.subr.bf16.mxu0 %v919_v0 }
  0x6b   :  { %706 = vmatpush3.bf16.msra.mxu0 %v771_v22 }
  0x6c   :  { %707 = vmatprep.subr.bf16.mxu0 %v919_v0 }
  0x6f   :  { %708 = vmatpush3.bf16.msra.mxu0 %v772_v23 }
  0x70   :  { %709 = vmatprep.subr.bf16.mxu0 %v919_v0 }
  0x73   :  { %710 = vmatpush3.bf16.msra.mxu0 %v773_v24 }
  0x74   :  { %711 = vmatprep.subr.bf16.mxu0 %v919_v0 }
  0x77   :  { %712 = vmatpush3.bf16.msra.mxu0 %v774_v33 }
  0x78   :  { %713 = vmatprep.subr.bf16.mxu0 %v919_v0 }
  0x7b   :  { %714 = vmatpush3.bf16.msra.mxu0 %v775_v34 }
 0x11e   :  { %v207_v26 = vpop.f32.mrf.mxu0 }
 0x11f   :  { %v208_v27 = vadd.f32 %v587_v25, %v207_v26 }
 0x120   :  { %v677_v28 = vpop.f32.mrf.mxu0 }
 0x121   :  { %v213_v29 = vmax.f32 %v208_v27, 0.0 }
 0x122   :  { %v210_v30 = vpop.f32.mrf.mxu0 }
 0x123   :  { %v231_v31 = vpack.c.bf16 %v213_v29, %v213_v29 }
 0x124   :  { %v678_v32 = vpop.f32.mrf.mxu0 }
 0x125   :  { %696 = vmatmul.mubr.bf16.vlgmr.msra.gmra.mxu1 %v231_v31 }
 0x126   :  { %735 = vmatprep.mubr.msk.bf16.mxu1 %vm920_vm0, %v919_v0  ;;  %720 = vmatpush3.bf16.msra.mxu1 %v776_v35 }
 0x127   :  { %721 = vmatprep.subr.bf16.mxu1 %v919_v0 }
 0x12a   :  { %722 = vmatpush3.bf16.msra.mxu1 %v777_v36 }
 0x12b   :  { %723 = vmatprep.subr.bf16.mxu1 %v919_v0 }
 0x12e   :  { %724 = vmatpush3.bf16.msra.mxu1 %v778_v37 }
 0x12f   :  { %725 = vmatprep.subr.bf16.mxu1 %v919_v0 }
 0x132   :  { %726 = vmatpush3.bf16.msra.mxu1 %v779_v38 }
 0x133   :  { %727 = vmatprep.subr.bf16.mxu1 %v919_v0 }
 0x136   :  { %728 = vmatpush3.bf16.msra.mxu1 %v780_v39 }
 0x137   :  { %729 = vmatprep.subr.bf16.mxu1 %v919_v0 }
 0x13a   :  { %730 = vmatpush3.bf16.msra.mxu1 %v781_v40 }
 0x13b   :  { %731 = vmatprep.subr.bf16.mxu1 %v919_v0 }
 0x13e   :  { %732 = vmatpush3.bf16.msra.mxu1 %v782_v49 }
 0x13f   :  { %733 = vmatprep.subr.bf16.mxu1 %v919_v0 }
 0x142   :  { %734 = vmatpush3.bf16.msra.mxu1 %v783_v50 }
 0x1e5   :  { %v320_v42 = vpop.f32.mrf.mxu1 }
 0x1e6   :  { %v321_v43 = vadd.f32 %v596_v41, %v320_v42 }
 0x1e7   :  { %v697_v44 = vpop.f32.mrf.mxu1 }
 0x1e8   :  { %v326_v45 = vmax.f32 %v321_v43, 0.0 }
 0x1e9   :  { %v323_v46 = vpop.f32.mrf.mxu1 }
 0x1ea   :  { %v344_v47 = vpack.c.bf16 %v326_v45, %v326_v45 }
 0x1eb   :  { %v698_v48 = vpop.f32.mrf.mxu1 }
 0x1ec   :  { %716 = vmatmul.mubr.bf16.vlgmr.msra.gmra.mxu0 %v344_v47 }
 0x2ac   :  { %v433_v52 = vpop.f32.mrf.mxu0 }
 0x2ad   :  { %v434_v53 = vadd.f32 %v605_v51, %v433_v52 }
 0x2ae   :  { %v717_v54 = vpop.f32.mrf.mxu0 }
 0x2af   :  { %v439_v55 = vmax.f32 %v434_v53, 0.0 }
 0x2b0   :  { %v436_v56 = vpop.f32.mrf.mxu0 }
 0x2b1   :  { %v457_v57 = vpack.c.bf16 %v439_v55, %v439_v55 }
 0x2b2   :  { %v718_v58 = vpop.f32.mrf.mxu0 }
 0x2b3   :  { %736 = vmatmul.mubr.bf16.vlgmr.msra.gmra.mxu1 %v457_v57 }
 0x373   :  { %v546_v61 = vpop.f32.mrf.mxu1 }
 0x374   :  { %v547_v62 = vadd.f32 %v614_v60, %v546_v61 }
 0x375   :  { %v737_v63 = vpop.f32.mrf.mxu1 }
 0x376   :  { %v552_v0 = vmax.f32 %v547_v62, 0.0 }
 0x377   :  { %v549_v1 = vpop.f32.mrf.mxu1 }
 0x378   :  { %553 = vadd.xlane.f32.xlu0 %v552_v0 }
 0x379   :  { %v738_v2 = vpop.f32.mrf.mxu1 }
 0x38e   :  { %559 = vperm.xlu0 %750, %v552_v0  }
 0x401   :  { %v554_v3 = vpop.xlane.xlu0 %553 }
 0x402   :  { %v555_v4 = vsub.f32 %v554_v3, %v552_v0 }
 0x404   :  { %v556_v5 = vmul.f32 0.125, %v555_v4 }
 0x406   :  { %565 = vperm.xlu1 %751, %v556_v5  }
 0x409   :  { %v560_v6 = vpop.permute.xlu0 %559 }
 0x40a   :  { %v562_v7 = vadd.f32 %v560_v6, %v552_v0 }
 0x481   :  { %v566_v8 = vpop.permute.xlu1 %565 }
 0x482   :  { %v568_v9 = vsub.f32 %v562_v7, %v566_v8 }
 0x484   :  { %569 = vst [vmem:[#allocation11] sm:$0xff] %v568_v9 }
 0x485   :  { %895 = shalt.err (!%p892_p1)
}
 0x486   :  { %579 = dma.vmem_to_hbm [thread:$0]  %s577_s16, 128, %s1064_s9, [#allocation4]  }
 0x487   :  { %910 = dma.done.wait [#allocation4], 128  }
 0x488   :  { %911 = vsyncadd [#allocation4], 4294967168 }
 0x489   :  { %583 = vsyncpa [#allocation3], 1 }
 0x48a   :  { %584 = vsyncpa [#allocation6], 1 }
 0x48b   :  { %585 = vsyncpa [#allocation9], 1 }
 0x48c   :  { %586 = vsyncpa [#allocation4], 1 }

</bundles_post_ra>
